<compile_context>
chip_gen: v6e
topology: v6e:2x2x1
jax: 0.10.0
libtpu: 0.0.40
codegen_flags: <defaults>
</compile_context>

<pallas_src>
import jax
import jax.numpy as jnp
from jax.experimental import pallas as pl
from jax.experimental.pallas import tpu as pltpu

DTYPE = jnp.float32
LANES = 128

# Problem constants (same as the PyTorch script)
TMIN, XMIN = 0.0, -1.0
TMAX, XMAX = 1.0, 1.0


def scaling_kernel(x_ref, scale_ref, offset_ref, o_ref):
    """x_ref/o_ref: (block_rows, 128) VMEM tiles of the flattened input.
    scale_ref/offset_ref: (1, 128) lane-interleaved affine params (same block
    every grid step -> fetched once, stays resident).  Body = one vector FMA."""
    o_ref[...] = x_ref[...] * scale_ref[...] + offset_ref[...]


def _round_up(v, m):
    return ((v + m - 1) // m) * m


def scaling_layer(x, lb, ub, *, block_rows=2048):
    """x: (N, F); lb/ub broadcastable to (1, F).  Same math as the PyTorch
    ScalingLayer.forward: 2*(x - lb)/(ub - lb) - 1.

    block_rows tuning: ~1024 on v5e, 1024-2048 on v6e, 2048-4096 on v7x.
    The default 2048 (1 MiB blocks) is safe everywhere."""
    n, f = x.shape
    lb = jnp.asarray(lb, x.dtype).reshape(-1)   # (F,)
    ub = jnp.asarray(ub, x.dtype).reshape(-1)   # (F,)

    # Fold lb/ub into one affine transform (host side, once).
    # Inherited from the original module: undefined (inf/nan) if ub[i] == lb[i].
    scale = (2.0 / (ub - lb)).astype(x.dtype)
    offset = (-2.0 * lb / (ub - lb) - 1.0).astype(x.dtype)

    if LANES % f != 0:
        # Lane-interleave trick needs F | 128; rare edge case -> let XLA fuse it.
        return x * scale[None, :] + offset[None, :]

    # Lane-interleaved params: flat element e maps to feature e % F, and since
    # F divides 128 the pattern is identical in every 128-lane row.
    scale_vec = jnp.tile(scale, LANES // f).reshape(1, LANES)
    offset_vec = jnp.tile(offset, LANES // f).reshape(1, LANES)

    sub = 8 * (4 // jnp.dtype(x.dtype).itemsize)   # sublane multiple: f32->8, bf16->16
    total = n * f
    rows = pl.cdiv(total, LANES)

    x_flat = x.reshape(-1)                          # free (row-major)
    padded = total != rows * LANES
    if padded:
        # Only path that costs an extra copy; pad rows to a sublane multiple too.
        rows = _round_up(rows, sub)
        x_flat = jnp.zeros((rows * LANES,), x.dtype).at[:total].set(x_flat)
    x2d = x_flat.reshape(rows, LANES)               # free view when not padded

    # Tile sizing: multiple of `sub`, never larger than the (rounded-up) data,
    # at least 512 rows whenever the data allows (amortizes per-grid-step cost).
    br = min(block_rows, _round_up(rows, sub))
    br = max(sub, _round_up(br, sub))
    if rows >= 512:
        br = max(br, 512)

    out2d = pl.pallas_call(
        scaling_kernel,
        out_shape=jax.ShapeDtypeStruct((rows, LANES), x.dtype),
        grid=(pl.cdiv(rows, br),),
        in_specs=[
            pl.BlockSpec((br, LANES), lambda i: (i, 0)),
            pl.BlockSpec((1, LANES), lambda i: (0, 0)),   # scale_vec (resident)
            pl.BlockSpec((1, LANES), lambda i: (0, 0)),   # offset_vec (resident)
        ],
        out_specs=pl.BlockSpec((br, LANES), lambda i: (i, 0)),
        compiler_params=pltpu.CompilerParams(
            dimension_semantics=("parallel",)),           # v7x: shard over 2 TCs
    )(x2d, scale_vec, offset_vec)

    if padded:
        return out2d.reshape(-1)[:total].reshape(n, f)
    return out2d.reshape(n, f)                            # free view


if __name__ == "__main__":
    key = jax.random.PRNGKey(0)

    # Module buffers: lb = [tmin, xmin], ub = [tmax, xmax]
    lb = jnp.array([TMIN, XMIN], dtype=DTYPE).reshape(1, -1)   # (1, 2)
    ub = jnp.array([TMAX, XMAX], dtype=DTYPE).reshape(1, -1)   # (1, 2)

    # Small example consistent with the module: batch of 8 (t, x) points.
    n, f = 8, 2
    u = jax.random.uniform(key, (n, f), dtype=DTYPE)
    x = lb + u * (ub - lb)                                      # (8, 2)

    out = scaling_layer(x, lb, ub)
    jax.block_until_ready(out)

    ref = 2.0 * (x - lb) / (ub - lb) - 1.0
    assert out.shape == x.shape and out.dtype == x.dtype
    assert jnp.allclose(out, ref, atol=1e-6, rtol=1e-6)

    # Larger check exercising multiple row tiles: N*F is a multiple of 128, so
    # the reshapes are free views (no padding copy); rows=1024 -> 2 tiles of 512.
    n2 = 65536
    u2 = jax.random.uniform(jax.random.PRNGKey(1), (n2, f), dtype=DTYPE)
    x2 = lb + u2 * (ub - lb)
    out2 = scaling_layer(x2, lb, ub, block_rows=512)
    jax.block_until_ready(out2)
    ref2 = 2.0 * (x2 - lb) / (ub - lb) - 1.0
    assert jnp.allclose(out2, ref2, atol=1e-6, rtol=1e-6)

    print("KERNEL_OK")
</pallas_src>

<mosaic_0001>
module attributes {stable_mosaic.version = 11 : i64} {
  func.func @scaling_kernel(%arg0: i32, %arg1: memref<8x128xf32, #tpu.memory_space<vmem>>, %arg2: memref<1x128xf32, #tpu.memory_space<vmem>>, %arg3: memref<1x128xf32, #tpu.memory_space<vmem>>, %arg4: memref<8x128xf32, #tpu.memory_space<vmem>>) attributes {dimension_semantics = [#tpu.dimension_semantics<parallel>], iteration_bounds = array<i64: 1>, scalar_prefetch = 0 : i64, scratch_operands = 0 : i64, tpu.core_type = #tpu.core_type<tc>, window_params = [{transform_indices = @transform_0, window_bounds = array<i64: 8, 128>}, {pipeline_mode = #tpu.pipeline_mode<synchronous>, transform_indices = @transform_1, window_bounds = array<i64: 1, 128>}, {pipeline_mode = #tpu.pipeline_mode<synchronous>, transform_indices = @transform_2, window_bounds = array<i64: 1, 128>}, {transform_indices = @transform_3, window_bounds = array<i64: 8, 128>}]} {
    %c0 = arith.constant 0 : index
    %c0_0 = arith.constant 0 : index
    %0 = vector.load %arg1[%c0, %c0_0] : memref<8x128xf32, #tpu.memory_space<vmem>>, vector<8x128xf32>
    %c0_1 = arith.constant 0 : index
    %c0_2 = arith.constant 0 : index
    %1 = vector.load %arg2[%c0_1, %c0_2] : memref<1x128xf32, #tpu.memory_space<vmem>>, vector<1x128xf32>
    %2 = vector.broadcast %1 : vector<1x128xf32> to vector<8x128xf32>
    %3 = arith.mulf %0, %2 : vector<8x128xf32>
    %c0_3 = arith.constant 0 : index
    %c0_4 = arith.constant 0 : index
    %4 = vector.load %arg3[%c0_3, %c0_4] : memref<1x128xf32, #tpu.memory_space<vmem>>, vector<1x128xf32>
    %5 = vector.broadcast %4 : vector<1x128xf32> to vector<8x128xf32>
    %6 = arith.addf %3, %5 : vector<8x128xf32>
    %c0_5 = arith.constant 0 : index
    %c0_6 = arith.constant 0 : index
    %7 = vector.load %arg4[%c0_5, %c0_6] : memref<8x128xf32, #tpu.memory_space<vmem>>, vector<8x128xf32>
    tpu.vector_store %arg4[%c0_5, %c0_6], %6 {strides = array<i32>} : memref<8x128xf32, #tpu.memory_space<vmem>>, vector<8x128xf32>,
    return
  }
  func.func @transform_0(%arg0: i32) -> (i32, i32) {
    %c0_i32 = arith.constant 0 : i32
    %c0_i32_0 = arith.constant 0 : i32
    return %arg0, %c0_i32 : i32, i32
  }
  func.func @transform_1(%arg0: i32) -> (i32, i32) {
    %c0_i32 = arith.constant 0 : i32
    %c0_i32_0 = arith.constant 0 : i32
    %c0_i32_1 = arith.constant 0 : i32
    return %c0_i32, %c0_i32_0 : i32, i32
  }
  func.func @transform_2(%arg0: i32) -> (i32, i32) {
    %c0_i32 = arith.constant 0 : i32
    %c0_i32_0 = arith.constant 0 : i32
    %c0_i32_1 = arith.constant 0 : i32
    return %c0_i32, %c0_i32_0 : i32, i32
  }
  func.func @transform_3(%arg0: i32) -> (i32, i32) {
    %c0_i32 = arith.constant 0 : i32
    %c0_i32_0 = arith.constant 0 : i32
    return %arg0, %c0_i32 : i32, i32
  }
}

</mosaic_0001>

<bundles_post_ra>
// kernel: tpu_custom_call.1
= control target key start
LH: loop header
LB: loop body
LE: loop exit
PB: predicated region body
PF: predicated region fallthrough
CT: control target
= control target key end

     0   :  { %8 = vsyncpa [#allocation3], 0  ;;  %s142_s0 = inlined_call_operand.hbm [shape: f32[8,128], index: 0, kind: input, shape index: {}]   ;;  %s143_s1 = inlined_call_operand.vmem [shape: f32[1,128], index: 1, kind: input, shape index: {}]   ;;  %s144_s2 = inlined_call_operand.vmem [shape: f32[1,128], index: 2, kind: input, shape index: {}]   ;;  %s145_s3 = inlined_call_operand.hbm [shape: f32[8,128], index: 3, kind: output, shape index: {}]  }
   0x1   :  { %9 = vsyncpa [#allocation4], 0  ;;  %s108_s12 = smov [#allocation2]  }
   0x2   :  { %s16_s13 = sshll.u32 %s108_s12, 4  ;;  %s17_s13 = int_to_ptr.vmem [resolvable:$true] %s16_s13 }
   0x3   :  { %s72_s14 = scalar_lea.vmem %s17_s13, 128  ;;  %p77_p1 = scmp.lt.s32.totalorder %s17_s13, %s17_s13 }
   0x4   :  { %p73_p0 = scmp.ne.s32.totalorder %s17_s13, %s72_s14  ;;  %p78_p2 = scmp.lt.s32.totalorder %s72_s14, %s72_s14 }
   0x6   :  { %p79_p3 = por %p78_p2, %p77_p1 }
   0x8   :  { %p80_p4 = pnand %p79_p3, %p73_p0 }
   0xa   :  { %83 = shalt.err (!%p80_p4)
}
   0xb   :  { %19 = dma.hbm_to_vmem [thread:$0]  %s142_s0, 128, %s17_s13, [#allocation3]  }
   0xc   :  { %104 = dma.done.wait [#allocation3], 128  }
   0xd   :  { %105 = vsyncadd [#allocation3], 4294967168  ;;  %v27_v0 = vld [vmem:[#allocation2] sm:$0xff]  ;;  %s109_s21 = smov [#allocation5]  }
   0xe   :  { %v60_v1 = vld [vmem:[%s143_s1] ss:$0 sm:$0xff]  ;;  %s51_s22 = sshll.u32 %s109_s21, 4  ;;  %s52_s22 = int_to_ptr.vmem [resolvable:$true] %s51_s22 }
   0xf   :  { %v61_v2 = vld [vmem:[%s144_s2] ss:$0 sm:$0xff]  ;;  %v35_v3 = vmul.f32 %v60_v1, %v27_v0  ;;  %s84_s23 = scalar_lea.vmem %s52_s22, 128  ;;  %p89_p6 = scmp.lt.s32.totalorder %s52_s22, %s52_s22 }
  0x10   :  { %p85_p5 = scmp.ne.s32.totalorder %s52_s22, %s84_s23  ;;  %p90_p7 = scmp.lt.s32.totalorder %s84_s23, %s84_s23 }
  0x11   :  { %v43_v4 = vadd.f32 %v61_v2, %v35_v3 }
  0x12   :  { %p91_p8 = por %p90_p7, %p89_p6 }
  0x13   :  { %44 = vst [vmem:[#allocation5] sm:$0xff] %v43_v4 }
  0x14   :  { %p92_p9 = pnand %p91_p8, %p85_p5 }
  0x16   :  { %95 = shalt.err (!%p92_p9)
}
  0x17   :  { %54 = dma.vmem_to_hbm [thread:$0]  %s52_s22, 128, %s145_s3, [#allocation4]  }
  0x18   :  { %106 = dma.done.wait [#allocation4], 128  }
  0x19   :  { %107 = vsyncadd [#allocation4], 4294967168 }
  0x1a   :  { %58 = vsyncpa [#allocation3], 1 }
  0x1b   :  { %59 = vsyncpa [#allocation4], 1 }

</bundles_post_ra>
